<compile_context>
chip_gen: v7x
topology: tpu7x:2x2x1
jax: 0.10.0
libtpu: 0.0.40
codegen_flags: <defaults>
</compile_context>

<pallas_src>
import functools

import jax
import jax.numpy as jnp
from jax.experimental import pallas as pl
from jax.experimental.pallas import tpu as pltpu


def _round_up(v, m):
    return ((v + m - 1) // m) * m


def _label_smoothing_kernel(x_ref, t_ref, out_ref, *, confidence, smoothing,
                            n_rows, block_rows, steps_per_chunk):
    ci = pl.program_id(0)   # parallel chunk axis
    cj = pl.program_id(1)   # reduction axis (arbitrary)

    # Output block is resident across the inner (reduction) axis: init at the
    # first inner step, accumulate into it every step.
    @pl.when(cj == 0)
    def _():
        out_ref[...] = jnp.zeros_like(out_ref)

    # x.float(), target.float()
    x = x_ref[...].astype(jnp.float32)          # (block_rows, C)
    t = t_ref[...].astype(jnp.float32)          # (block_rows, C)
    c = x.shape[-1]

    # Numerically stable log_softmax along the class (last) axis.
    m = jnp.max(x, axis=-1, keepdims=True)
    shifted = x - m
    lse = jnp.log(jnp.sum(jnp.exp(shifted), axis=-1, keepdims=True))
    logprobs = shifted - lse                    # (block_rows, C)

    # confidence * nll + smoothing * smooth  ==  sum_c(-logp * w)
    # with w = confidence * target + smoothing / C.
    w = confidence * t + (smoothing / c)
    contrib = -logprobs * w                     # (block_rows, C)

    # Mask rows past the true batch size (ragged N / clamped duplicate tail
    # block on the parallel-chunk axis).
    row0 = (ci * steps_per_chunk + cj) * block_rows
    row_ids = row0 + jax.lax.broadcasted_iota(jnp.int32, (block_rows, 1), 0)
    contrib = jnp.where(row_ids < n_rows, contrib, 0.0)

    # Column-sum (over rows) into the resident per-chunk partial: lane-dense,
    # no per-step cross-lane reduction, no masked scalar store.
    out_ref[0] += jnp.sum(contrib, axis=0, keepdims=True)   # (1, C)


def label_smoothing_loss(x, target, smoothing=0.1, *, block_rows=None,
                         vmem_data_budget_bytes=24 * 1024 * 1024):
    """Training-mode LabelSmoothing forward: scalar mean loss (f32)."""
    assert x.ndim == 2 and x.shape == target.shape, "expect (N, C) logits/targets"
    n, c = x.shape
    confidence = 1.0 - smoothing

    if block_rows is None:
        # 2 inputs x 2 pipeline buffers of (block_rows, C) must fit the budget.
        bytes_per_row = 2 * (jnp.dtype(x.dtype).itemsize +
                             jnp.dtype(target.dtype).itemsize) * c
        block_rows = max(8, (vmem_data_budget_bytes // bytes_per_row) // 8 * 8)
    block_rows = max(8, (block_rows // 8) * 8)
    block_rows = min(block_rows, _round_up(n, 8))

    total_steps = pl.cdiv(n, block_rows)
    num_chunks = 2 if total_steps >= 2 else 1     # 2 TCs on v7x; no-op elsewhere
    steps_per_chunk = pl.cdiv(total_steps, num_chunks)

    kernel = functools.partial(
        _label_smoothing_kernel,
        confidence=float(confidence),
        smoothing=float(smoothing),
        n_rows=n,
        block_rows=block_rows,
        steps_per_chunk=steps_per_chunk,
    )

    def in_map(ci, cj):
        # Clamp the row-block index for over-hanging steps of the last chunk;
        # their contribution is zeroed by the row mask inside the kernel.
        idx = jnp.minimum(ci * steps_per_chunk + cj, total_steps - 1)
        return (idx, 0)

    partials = pl.pallas_call(
        kernel,
        out_shape=jax.ShapeDtypeStruct((num_chunks, 1, c), jnp.float32),
        grid_spec=pl.GridSpec(
            grid=(num_chunks, steps_per_chunk),
            in_specs=[
                pl.BlockSpec((block_rows, c), in_map),
                pl.BlockSpec((block_rows, c), in_map),
            ],
            out_specs=pl.BlockSpec((1, 1, c), lambda ci, cj: (ci, 0, 0)),
        ),
        compiler_params=pltpu.CompilerParams(
            dimension_semantics=("parallel", "arbitrary"),
            vmem_limit_bytes=48 * 1024 * 1024,
        ),
    )(x, target)

    # Final tiny reduction + mean over the batch in JAX.
    return jnp.sum(partials) / n


def _reference(x, target, smoothing=0.1):
    x = x.astype(jnp.float32)
    target = target.astype(jnp.float32)
    logprobs = jax.nn.log_softmax(x, axis=-1)
    nll = -jnp.sum(logprobs * target, axis=-1)
    smooth = -jnp.mean(logprobs, axis=-1)
    return jnp.mean((1.0 - smoothing) * nll + smoothing * smooth)


if __name__ == "__main__":
    key = jax.random.PRNGKey(0)
    k1, k2, k3, k4 = jax.random.split(key, 4)

    # Case 1: small (batch, num_classes) consistent with the loss module.
    N, C = 8, 32
    x = jax.random.normal(k1, (N, C), dtype=jnp.float32)
    labels = jax.random.randint(k2, (N,), 0, C)
    target = jax.nn.one_hot(labels, C, dtype=jnp.float32)

    loss = label_smoothing_loss(x, target, smoothing=0.1)
    loss = jax.block_until_ready(loss)
    ref = _reference(x, target, smoothing=0.1)
    assert jnp.allclose(loss, ref, atol=1e-5, rtol=1e-5), (loss, ref)

    # Case 2: ragged N + multi-block grid (exercises the parallel-chunk axis,
    # the clamped duplicate tail block and the row-validity mask).
    N2, C2 = 20, 256
    x2 = jax.random.normal(k3, (N2, C2), dtype=jnp.float32)
    labels2 = jax.random.randint(k4, (N2,), 0, C2)
    target2 = jax.nn.one_hot(labels2, C2, dtype=jnp.float32)

    loss2 = label_smoothing_loss(x2, target2, smoothing=0.1, block_rows=8)
    loss2 = jax.block_until_ready(loss2)
    ref2 = _reference(x2, target2, smoothing=0.1)
    assert jnp.allclose(loss2, ref2, atol=1e-5, rtol=1e-5), (loss2, ref2)

    print("KERNEL_OK")
</pallas_src>

<mosaic_0001>
module attributes {stable_mosaic.version = 11 : i64} {
  func.func @_label_smoothing_kernel(%arg0: i32, %arg1: i32, %arg2: memref<8x32xf32, #tpu.memory_space<vmem>>, %arg3: memref<8x32xf32, #tpu.memory_space<vmem>>, %arg4: memref<1x1x32xf32, #tpu.memory_space<vmem>>) attributes {dimension_semantics = [#tpu.dimension_semantics<parallel>, #tpu.dimension_semantics<arbitrary>], iteration_bounds = array<i64: 1, 1>, scalar_prefetch = 0 : i64, scratch_operands = 0 : i64, tpu.core_type = #tpu.core_type<tc>, window_params = [{transform_indices = @transform_0, window_bounds = array<i64: 8, 32>}, {transform_indices = @transform_1, window_bounds = array<i64: 8, 32>}, {transform_indices = @transform_2, window_bounds = array<i64: 1, 1, 32>}]} {
    %c0_i32 = arith.constant 0 : i32
    %0 = arith.cmpi eq, %arg1, %c0_i32 : i32
    %1 = arith.extui %0 : i1 to i32
    %c0_i32_0 = arith.constant 0 : i32
    %2 = arith.cmpi ne, %1, %c0_i32_0 : i32
    scf.if %2 {
      %cst_17 = arith.constant 0.000000e+00 : f32
      %42 = vector.broadcast %cst_17 : f32 to vector<1x1x32xf32>
      %c0_18 = arith.constant 0 : index
      %c0_19 = arith.constant 0 : index
      %c0_20 = arith.constant 0 : index
      %43 = vector.load %arg4[%c0_18, %c0_19, %c0_20] : memref<1x1x32xf32, #tpu.memory_space<vmem>>, vector<1x1x32xf32>
      tpu.vector_store %arg4[%c0_18, %c0_19, %c0_20], %42 {strides = array<i32>} : memref<1x1x32xf32, #tpu.memory_space<vmem>>, vector<1x1x32xf32>,
    } else {
    }
    %c0 = arith.constant 0 : index
    %c0_1 = arith.constant 0 : index
    %3 = vector.load %arg2[%c0, %c0_1] : memref<8x32xf32, #tpu.memory_space<vmem>>, vector<8x32xf32>
    %c0_2 = arith.constant 0 : index
    %c0_3 = arith.constant 0 : index
    %4 = vector.load %arg3[%c0_2, %c0_3] : memref<8x32xf32, #tpu.memory_space<vmem>>, vector<8x32xf32>
    %cst = arith.constant dense<0xFF800000> : vector<8xf32>
    %5 = vector.multi_reduction <maximumf>, %3, %cst [1] : vector<8x32xf32> to vector<8xf32>
    %6 = vector.shape_cast %5 : vector<8xf32> to vector<8x1xf32>
    %7 = vector.broadcast %6 : vector<8x1xf32> to vector<8x32xf32>
    %8 = arith.subf %3, %7 : vector<8x32xf32>
    %9 = math.exp %8 : vector<8x32xf32>
    %cst_4 = arith.constant dense<0.000000e+00> : vector<8xf32>
    %10 = vector.multi_reduction <add>, %9, %cst_4 [1] : vector<8x32xf32> to vector<8xf32>
    %11 = vector.shape_cast %10 : vector<8xf32> to vector<8x1xf32>
    %12 = math.log %11 : vector<8x1xf32>
    %13 = vector.broadcast %12 : vector<8x1xf32> to vector<8x32xf32>
    %14 = arith.subf %8, %13 : vector<8x32xf32>
    %cst_5 = arith.constant 0.899999976 : f32
    %15 = vector.broadcast %cst_5 : f32 to vector<8x32xf32>
    %16 = arith.mulf %15, %4 : vector<8x32xf32>
    %cst_6 = arith.constant 3.125000e-03 : f32
    %17 = vector.broadcast %cst_6 : f32 to vector<8x32xf32>
    %18 = arith.addf %16, %17 : vector<8x32xf32>
    %cst_7 = arith.constant 0.000000e+00 : f32
    %19 = vector.broadcast %cst_7 : f32 to vector<8x32xf32>
    %20 = arith.subf %19, %14 : vector<8x32xf32>
    %21 = arith.mulf %20, %18 : vector<8x32xf32>
    %c1_i32 = arith.constant 1 : i32
    %22 = arith.muli %arg0, %c1_i32 : i32
    %23 = arith.addi %22, %arg1 : i32
    %c8_i32 = arith.constant 8 : i32
    %24 = arith.muli %23, %c8_i32 : i32
    %25 = tpu.iota {dimensions = array<i32: 0>} : vector<8x1xi32>
    %26 = vector.broadcast %24 : i32 to vector<8x1xi32>
    %27 = arith.addi %26, %25 : vector<8x1xi32>
    %c8_i32_8 = arith.constant 8 : i32
    %28 = vector.broadcast %c8_i32_8 : i32 to vector<8x1xi32>
    %29 = arith.cmpi slt, %27, %28 : vector<8x1xi32>
    %cst_9 = arith.constant 0.000000e+00 : f32
    %30 = vector.shape_cast %29 : vector<8x1xi1> to vector<8x1xi1>
    %31 = vector.broadcast %30 : vector<8x1xi1> to vector<8x32xi1>
    %32 = vector.broadcast %cst_9 : f32 to vector<8x32xf32>
    %33 = arith.select %31, %21, %32 : vector<8x32xi1>, vector<8x32xf32>
    %c0_10 = arith.constant 0 : index
    %c0_11 = arith.constant 0 : index
    %c0_12 = arith.constant 0 : index
    %34 = vector.load %arg4[%c0_10, %c0_11, %c0_12] : memref<1x1x32xf32, #tpu.memory_space<vmem>>, vector<1x1x32xf32>
    %35 = vector.shape_cast %34 : vector<1x1x32xf32> to vector<1x32xf32>
    %cst_13 = arith.constant dense<0.000000e+00> : vector<32xf32>
    %36 = vector.multi_reduction <add>, %33, %cst_13 [0] : vector<8x32xf32> to vector<32xf32>
    %37 = vector.shape_cast %36 : vector<32xf32> to vector<1x32xf32>
    %38 = arith.addf %35, %37 : vector<1x32xf32>
    %c0_14 = arith.constant 0 : index
    %c0_15 = arith.constant 0 : index
    %c0_16 = arith.constant 0 : index
    %39 = vector.load %arg4[%c0_14, %c0_15, %c0_16] : memref<1x1x32xf32, #tpu.memory_space<vmem>>, vector<1x1x32xf32>
    %40 = vector.shape_cast %39 : vector<1x1x32xf32> to vector<1x32xf32>
    %41 = vector.shape_cast %38 : vector<1x32xf32> to vector<1x1x32xf32>
    tpu.vector_store %arg4[%c0_14, %c0_15, %c0_16], %41 {strides = array<i32>} : memref<1x1x32xf32, #tpu.memory_space<vmem>>, vector<1x1x32xf32>,
    return
  }
  func.func @transform_0(%arg0: i32, %arg1: i32) -> (i32, i32) {
    %c1_i32 = arith.constant 1 : i32
    %0 = arith.muli %arg0, %c1_i32 : i32
    %1 = arith.addi %0, %arg1 : i32
    %c0_i32 = arith.constant 0 : i32
    %2 = arith.minsi %1, %c0_i32 : i32
    %c0_i32_0 = arith.constant 0 : i32
    %c0_i32_1 = arith.constant 0 : i32
    return %2, %c0_i32_0 : i32, i32
  }
  func.func @transform_1(%arg0: i32, %arg1: i32) -> (i32, i32) {
    %c1_i32 = arith.constant 1 : i32
    %0 = arith.muli %arg0, %c1_i32 : i32
    %1 = arith.addi %0, %arg1 : i32
    %c0_i32 = arith.constant 0 : i32
    %2 = arith.minsi %1, %c0_i32 : i32
    %c0_i32_0 = arith.constant 0 : i32
    %c0_i32_1 = arith.constant 0 : i32
    return %2, %c0_i32_0 : i32, i32
  }
  func.func @transform_2(%arg0: i32, %arg1: i32) -> (i32, i32, i32) {
    %c0_i32 = arith.constant 0 : i32
    %c0_i32_0 = arith.constant 0 : i32
    %c0_i32_1 = arith.constant 0 : i32
    return %arg0, %c0_i32, %c0_i32_0 : i32, i32, i32
  }
}

</mosaic_0001>

<bundles_post_ra>
// kernel: tpu_custom_call.1
= control target key start
LH: loop header
LB: loop body
LE: loop exit
PB: predicated region body
PF: predicated region fallthrough
CT: control target
= control target key end

     0   :  { %7 = vsyncpa [#allocation3], 0  ;;  %s258_s0 = inlined_call_operand.hbm [shape: f32[8,32], index: 0, kind: input, shape index: {}]   ;;  %s259_s1 = inlined_call_operand.hbm [shape: f32[8,32], index: 1, kind: input, shape index: {}]   ;;  %s260_s2 = inlined_call_operand.hbm [shape: f32[1,1,32], index: 2, kind: output, shape index: {}]  }
   0x1   :  { %8 = vsyncpa [#allocation6], 0 }
   0x2   :  { %9 = vsyncpa [#allocation4], 0  ;;  %s198_s9 = smov [#allocation2]   ;;  %s199_s11 = smov [#allocation5]  }
   0x3   :  { %s21_s10 = sshll.u32 %s198_s9, 4  ;;  %s36_s12 = sshll.u32 %s199_s11, 4  ;;  %s22_s10 = int_to_ptr.vmem [resolvable:$true] %s21_s10  ;;  %s37_s12 = int_to_ptr.vmem [resolvable:$true] %s36_s12 }
   0x4   :  { %s126_s15 = scalar_lea.hbm %s258_s0, 128 }
   0x5   :  { %p127_p0 = scmp.ne.s32.totalorder %s258_s0, %s126_s15  ;;  %p130_p1 = scmp.lt.u32.totalorder %s126_s15, %s258_s0 }
   0x7   :  { %p132_p2 = pnand %p130_p1, %p127_p0 }
   0x9   :  { %135 = shalt.err (!%p132_p2)
}
   0xa   :  { %s136_s20 = scalar_lea.vmem %s22_s10, 128  ;;  %p141_p4 = scmp.lt.s32.totalorder %s22_s10, %s22_s10 }
   0xb   :  { %p137_p3 = scmp.ne.s32.totalorder %s22_s10, %s136_s20  ;;  %p142_p5 = scmp.lt.s32.totalorder %s136_s20, %s136_s20 }
   0xd   :  { %p143_p6 = por %p142_p5, %p141_p4 }
   0xf   :  { %p144_p7 = pnand %p143_p6, %p137_p3 }
  0x11   :  { %147 = shalt.err (!%p144_p7)
}
  0x12   :  { %24 = dma.hbm_to_vmem [thread:$0]  %s258_s0, 128, %s22_s10, [#allocation3]  }
  0x13   :  { %s148_s25 = scalar_lea.hbm %s259_s1, 128 }
  0x14   :  { %p149_p8 = scmp.ne.s32.totalorder %s259_s1, %s148_s25  ;;  %p152_p9 = scmp.lt.u32.totalorder %s148_s25, %s259_s1 }
  0x16   :  { %p154_p10 = pnand %p152_p9, %p149_p8 }
  0x18   :  { %157 = shalt.err (!%p154_p10)
}
  0x19   :  { %s158_s30 = scalar_lea.vmem %s37_s12, 128  ;;  %p163_p12 = scmp.lt.s32.totalorder %s37_s12, %s37_s12 }
  0x1a   :  { %p159_p11 = scmp.ne.s32.totalorder %s37_s12, %s158_s30  ;;  %p164_p13 = scmp.lt.s32.totalorder %s158_s30, %s158_s30 }
  0x1c   :  { %p165_p0 = por %p164_p13, %p163_p12 }
  0x1e   :  { %p166_p1 = pnand %p165_p0, %p159_p11 }
  0x20   :  { %169 = shalt.err (!%p166_p1)
}
  0x21   :  { %39 = dma.hbm_to_vmem [thread:$0]  %s259_s1, 128, %s37_s12, [#allocation6]  }
  0x22   :  { %192 = dma.done.wait [#allocation3], 128  }
  0x23   :  { %193 = vsyncadd [#allocation3], 4294967168 }
  0x24   :  { %194 = dma.done.wait [#allocation6], 128  }
  0x25   :  { %195 = vsyncadd [#allocation6], 4294967168  ;;  %vm60_vm0 = vcmask 261120   ;;  %v58_v0 = vld [vmem:[#allocation2] sm:$0xff]  ;;  %vm56_vm1 = vcmask 253952   ;;  %v200_v7 = vmov 0.0  }
  0x26   :  { %v61_v1 = vsel %vm60_vm0, %v58_v0, -inf  ;;  %57 = vst.msk [vmem:[#allocation7] sm:$0x1] %vm56_vm1, %v200_v7  ;;  %v59_v9 = vld [vmem:[#allocation5] sm:$0xff]  ;;  %s201_s1 = smov [#allocation7]  }
  0x27   :  { %62 = vmax.xlane.f32.xlu0 %v61_v1  ;;  %v73_v10 = vmul.f32 0.9, %v59_v9  ;;  %s104_s4 = sshll.u32 %s201_s1, 4  ;;  %s105_s4 = int_to_ptr.vmem [resolvable:$true] %s104_s4 }
  0x28   :  { %s170_s5 = scalar_lea.vmem %s105_s4, 16  ;;  %s174_s6 = scalar_lea.vmem %s105_s4, 32 }
  0x29   :  { %v74_v13 = vadd.f32 0.003125, %v73_v10  ;;  %p171_p2 = scmp.ne.s32.totalorder %s105_s4, %s170_s5  ;;  %p175_p3 = scmp.lt.s32.totalorder %s105_s4, %s105_s4 }
  0x2a   :  { %p176_p4 = scmp.lt.s32.totalorder %s174_s6, %s170_s5 }
  0x2c   :  { %p177_p5 = por %p176_p4, %p175_p3 }
  0x2d   :  { %v87_v23 = vld [vmem:[#allocation7] sm:$0x1] }
  0x2e   :  { %p178_p6 = pnand %p177_p5, %p171_p2 }
  0xb4   :  { %v63_v2 = vpop.xlane.xlu0 %62 }
  0xb5   :  { %v64_v3 = vsub.f32 %v58_v0, %v63_v2 }
  0xb7   :  { %v65_v4 = vmul.f32 1.442695, %v64_v3 }
  0xb9   :  { %122 = vpow2.f32 %v65_v4 }
  0xc3   :  { %v123_v5 = vpop.eup %122 }
  0xc4   :  { %v67_v6 = vsel %vm60_vm0, %v123_v5, 0.0 }
  0xc5   :  { %68 = vadd.xlane.f32.xlu0 %v67_v6 }
 0x152   :  { %v69_v8 = vpop.xlane.xlu0 %68 }
 0x153   :  { %124 = vlog2.f32 %v69_v8 }
 0x15d   :  { %v125_v11 = vpop.eup %124 }
 0x15e   :  { %v71_v12 = vmul.f32 0.6931472, %v125_v11 }
 0x160   :  { %v72_v14 = vsub.f32 %v64_v3, %v71_v12 }
 0x162   :  { %v75_v15 = vsub.f32 0.0, %v72_v14 }
 0x164   :  { %v76_v16 = vmul.f32 %v75_v15, %v74_v13 }
 0x166   :  { %v88_v17 = vsel %vm60_vm0, %v76_v16, 0.0 }
 0x167   :  { %v89_v18 = vrot.slane %v88_v17, 4 }
 0x169   :  { %v90_v19 = vadd.f32 %v89_v18, %v88_v17 }
 0x16b   :  { %v91_v20 = vrot.slane %v90_v19, 2 }
 0x16d   :  { %v92_v21 = vadd.f32 %v91_v20, %v90_v19 }
 0x16f   :  { %v93_v22 = vrot.slane %v92_v21, 1 }
 0x171   :  { %v94_v24 = vadd.f32 %v93_v22, %v92_v21 }
 0x173   :  { %v95_v25 = vadd.f32 %v94_v24, %v87_v23 }
 0x175   :  { %97 = vst.msk [vmem:[#allocation7] sm:$0x1] %vm56_vm1, %v95_v25 }
 0x176   :  { %181 = shalt.err (!%p178_p6)
}
 0x177   :  { %s182_s9 = scalar_lea.hbm %s260_s2, 16 }
 0x178   :  { %p183_p7 = scmp.ne.s32.totalorder %s260_s2, %s182_s9  ;;  %p186_p8 = scmp.lt.u32.totalorder %s182_s9, %s260_s2 }
 0x17a   :  { %p188_p9 = pnand %p186_p8, %p183_p7 }
 0x17c   :  { %191 = shalt.err (!%p188_p9)
}
 0x17d   :  { %107 = dma.vmem_to_hbm [thread:$0]  %s105_s4, 16, %s260_s2, [#allocation4]  }
 0x17e   :  { %196 = dma.done.wait [#allocation4], 16  }
 0x17f   :  { %197 = vsyncadd [#allocation4], 4294967280 }
 0x180   :  { %111 = vsyncpa [#allocation3], 1 }
 0x181   :  { %112 = vsyncpa [#allocation6], 1 }
 0x182   :  { %113 = vsyncpa [#allocation4], 1 }

</bundles_post_ra>
